<compile_context>
chip_gen: v7x
topology: tpu7x:2x2x1
jax: 0.10.0
libtpu: 0.0.40
codegen_flags: <defaults>
</compile_context>

<pallas_src>
import functools

import jax
import jax.numpy as jnp
from jax.experimental import pallas as pl
from jax.experimental.pallas import tpu as pltpu


def _ffn_kernel(x_ref, w1_ref, b1_ref, w2_ref, b2_ref, o_ref, acc_ref):
    # x_ref:  (tm, D)     w1_ref: (D, tff)   b1_ref: (1, tff)
    # w2_ref: (tff, D)    b2_ref: (1, D)     o_ref:  (tm, D)
    # acc_ref: (tm, D) f32 scratch, persists across the ff (reduction) axis.
    ff = pl.program_id(1)

    @pl.when(ff == 0)
    def _():
        acc_ref[...] = jnp.zeros_like(acc_ref)

    # linear1 block + bias + ReLU (MXU matmul, f32 accumulation).
    h = jnp.dot(x_ref[...], w1_ref[...], preferred_element_type=jnp.float32)
    h = jnp.maximum(h + b1_ref[...], 0.0)

    # Partial linear2: accumulate this d_ff slab's contribution.
    # Casting h back to the weight dtype is a deliberate (documented)
    # precision drop when weights are bf16; exact for f32 weights.
    acc_ref[...] += jnp.dot(h.astype(w2_ref.dtype), w2_ref[...],
                            preferred_element_type=jnp.float32)

    @pl.when(ff == pl.num_programs(1) - 1)
    def _():
        o_ref[...] = (acc_ref[...] + b2_ref[...]).astype(o_ref.dtype)


def _pick_tile(dim, align, cap):
    """Largest multiple of `align` that divides `dim`, capped at `cap`.

    Falls back to the full dimension when `dim` is not `align`-aligned
    (full-extent blocks are always legal for the (8, 128) constraint).
    """
    if dim % align != 0:
        return dim
    t = max(align, (min(cap, dim) // align) * align)
    while dim % t != 0:
        t -= align
    return t


def _chip_vmem_bytes():
    """Per-core VMEM capacity; conservative 64 MiB fallback (safe on v7x)."""
    try:
        return int(pltpu.get_tpu_info().vmem_capacity_bytes)
    except Exception:
        return 64 << 20


@functools.partial(jax.jit, static_argnames=("tm_cap", "tff_cap"))
def feed_forward(x, w1, b1, w2, b2, *, tm_cap=1024, tff_cap=None):
    """x: [batch, seq, d_model] -> [batch, seq, d_model] (FFN, eval-mode dropout)."""
    batch, seq, d_model = x.shape
    d_ff = w1.shape[1]
    m = batch * seq

    x_isz = jnp.dtype(x.dtype).itemsize
    w_isz = jnp.dtype(w1.dtype).itemsize

    # Pad rows to the sublane pack (8 for f32, 16 for bf16) -> dense output
    # stores and a tile size that never blows past tm_cap on awkward M.
    pack = 8 * max(1, 4 // x_isz)
    m_pad = ((m + pack - 1) // pack) * pack
    x2d = x.reshape(m, d_model)
    if m_pad != m:
        x2d = jnp.pad(x2d, ((0, m_pad - m), (0, 0)))

    chip_vmem = _chip_vmem_bytes()
    # Spend ~60% of per-core VMEM on our working set; rest is compiler scratch.
    budget = (chip_vmem * 3) // 5

    # d_ff slab: wide enough for >=1 KiB weight-DMA rows and full 256-wide MXU
    # passes (256 f32 / 512 bf16); wider only burns VMEM that should go to tm.
    if tff_cap is None:
        tff_cap = max(256, 1024 // w_isz)
    tff = _pick_tile(d_ff, 128, tff_cap)

    # Rows: as large as the remaining budget allows (tm is the only lever on
    # total HBM weight traffic), capped at tm_cap.
    per_row = d_model * (4 * x_isz + 4)               # x(2) + out(2) + f32 acc
    w_bytes = (4 * d_model * tff + 2 * tff + 2 * d_model) * w_isz
    avail = max(budget - w_bytes, per_row * pack)
    tm_max = max(pack, min(tm_cap, avail // per_row))
    tm = _pick_tile(m_pad, pack, tm_max)
    # TODO(synk): for very large d_model (>=8192) add an output-column grid
    # axis tiling w2/out/acc along D instead of only shrinking tm.

    # Keep >=2 M-tiles when possible so v7x megacore sharding has work per core.
    if m_pad // tm < 2:
        half = _pick_tile(m_pad, pack, max(pack, tm // 2))
        if m_pad // half >= 2:
            tm = half

    grid = (m_pad // tm, d_ff // tff)

    # Working-set estimate (double-buffered tiles + f32 accumulator) and a
    # VMEM limit clamped below the chip's physical per-core capacity.
    vmem_bytes = tm * per_row + w_bytes
    vmem_limit = min(max(int(vmem_bytes * 3 // 2), 16 << 20),
                     chip_vmem - (8 << 20))

    # Advisory cost hint for XLA's scheduler.
    flops = 4 * m_pad * d_model * d_ff   # 2*M*D*4D (linear1) + 2*M*4D*D (linear2)
    bytes_accessed = (
        m_pad * d_model * x_isz * 2                                 # x in + out
        + grid[0] * (2 * d_model * d_ff + d_ff + d_model) * w_isz   # streamed W
    )
    cost = pl.CostEstimate(flops=flops, transcendentals=0,
                           bytes_accessed=bytes_accessed)

    out2d = pl.pallas_call(
        _ffn_kernel,
        out_shape=jax.ShapeDtypeStruct((m_pad, d_model), x.dtype),
        grid_spec=pltpu.PrefetchScalarGridSpec(
            num_scalar_prefetch=0,
            grid=grid,
            in_specs=[
                pl.BlockSpec((tm, d_model), lambda i, ff: (i, 0)),     # x
                pl.BlockSpec((d_model, tff), lambda i, ff: (0, ff)),   # w1
                pl.BlockSpec((1, tff), lambda i, ff: (0, ff)),         # b1
                pl.BlockSpec((tff, d_model), lambda i, ff: (ff, 0)),   # w2
                # b2 is grid-constant; default double-buffering costs only
                # ~2*D*itemsize, so it is left at the portable default.
                pl.BlockSpec((1, d_model), lambda i, ff: (0, 0)),      # b2
            ],
            out_specs=pl.BlockSpec((tm, d_model), lambda i, ff: (i, 0)),
            scratch_shapes=[pltpu.VMEM((tm, d_model), jnp.float32)],
        ),
        compiler_params=pltpu.CompilerParams(
            dimension_semantics=("parallel", "arbitrary"),
            vmem_limit_bytes=vmem_limit,
        ),
        cost_estimate=cost,
    )(x2d, w1, b1, w2, b2)

    return out2d[:m].reshape(batch, seq, d_model)


def init_params(key, d_model, dtype=jnp.float32):
    """Deterministic init matching nn.Linear's default U(-1/sqrt(fan_in), ...)."""
    d_ff = d_model * 4
    k1, k2, k3, k4 = jax.random.split(key, 4)
    bound1 = 1.0 / jnp.sqrt(d_model)
    bound2 = 1.0 / jnp.sqrt(d_ff)
    # Stored as [in, out] so the kernel computes x @ W + b.
    w1 = jax.random.uniform(k1, (d_model, d_ff), dtype, -bound1, bound1)
    b1 = jax.random.uniform(k2, (1, d_ff), dtype, -bound1, bound1)
    w2 = jax.random.uniform(k3, (d_ff, d_model), dtype, -bound2, bound2)
    b2 = jax.random.uniform(k4, (1, d_model), dtype, -bound2, bound2)
    return w1, b1, w2, b2


if __name__ == "__main__":
    # Small, lane-dense demo shapes: d_model multiple of 128.
    batch, seq, d_model = 2, 8, 128          # M = 16, d_ff = 512
    key = jax.random.PRNGKey(0)
    kx, kp = jax.random.split(key)

    x = jax.random.normal(kx, (batch, seq, d_model), dtype=jnp.float32)
    w1, b1, w2, b2 = init_params(kp, d_model)

    def ref_fn(xi, p1, pb1, p2, pb2):
        f32 = jnp.float32
        h = jnp.maximum(xi.astype(f32).reshape(-1, d_model) @ p1.astype(f32)
                        + pb1.astype(f32), 0.0)
        return (h @ p2.astype(f32) + pb2.astype(f32)).reshape(xi.shape)

    # Default (auto) tiles: gives a (2, 2) grid here -> exercises the
    # reduction accumulator init/finalize and the megacore-friendly M split.
    out = jax.block_until_ready(feed_forward(x, w1, b1, w2, b2))
    ref = ref_fn(x, w1, b1, w2, b2)
    assert out.shape == (batch, seq, d_model)
    assert jnp.allclose(out, ref, atol=1e-4, rtol=1e-4)

    # Explicit small tiles -> longer multi-step grid, same result.
    out_t = jax.block_until_ready(
        feed_forward(x, w1, b1, w2, b2, tm_cap=8, tff_cap=128))
    assert jnp.allclose(out_t, ref, atol=1e-4, rtol=1e-4)

    # Row-padding path: M = 5 is not sublane-aligned -> padded to 8, sliced back.
    xr = x[:1, :5]
    out_r = jax.block_until_ready(feed_forward(xr, w1, b1, w2, b2))
    assert jnp.allclose(out_r, ref_fn(xr, w1, b1, w2, b2), atol=1e-4, rtol=1e-4)

    # bf16 data path (f32 accumulation in-kernel), recommended for v5e's MXU.
    xb = x.astype(jnp.bfloat16)
    pb = tuple(p.astype(jnp.bfloat16) for p in (w1, b1, w2, b2))
    out_b = jax.block_until_ready(feed_forward(xb, *pb))
    ref_b = ref_fn(xb, *pb)
    assert jnp.allclose(out_b.astype(jnp.float32), ref_b, atol=3e-2, rtol=3e-2)

    print("KERNEL_OK")
</pallas_src>

<mosaic_0001>
module attributes {stable_mosaic.version = 11 : i64} {
  func.func @_ffn_kernel(%arg0: i32, %arg1: i32, %arg2: memref<8x128xf32, #tpu.memory_space<vmem>>, %arg3: memref<128x256xf32, #tpu.memory_space<vmem>>, %arg4: memref<1x256xf32, #tpu.memory_space<vmem>>, %arg5: memref<256x128xf32, #tpu.memory_space<vmem>>, %arg6: memref<1x128xf32, #tpu.memory_space<vmem>>, %arg7: memref<8x128xf32, #tpu.memory_space<vmem>>, %arg8: memref<8x128xf32, #tpu.memory_space<vmem>>) attributes {dimension_semantics = [#tpu.dimension_semantics<parallel>, #tpu.dimension_semantics<arbitrary>], iteration_bounds = array<i64: 2, 2>, scalar_prefetch = 0 : i64, scratch_operands = 1 : i64, tpu.core_type = #tpu.core_type<tc>, window_params = [{transform_indices = @transform_0, window_bounds = array<i64: 8, 128>}, {transform_indices = @transform_1, window_bounds = array<i64: 128, 256>}, {transform_indices = @transform_2, window_bounds = array<i64: 1, 256>}, {transform_indices = @transform_3, window_bounds = array<i64: 256, 128>}, {pipeline_mode = #tpu.pipeline_mode<synchronous>, transform_indices = @transform_4, window_bounds = array<i64: 1, 128>}, {transform_indices = @transform_5, window_bounds = array<i64: 8, 128>}]} {
    %c0_i32 = arith.constant 0 : i32
    %0 = arith.cmpi eq, %arg1, %c0_i32 : i32
    %1 = arith.extui %0 : i1 to i32
    %c0_i32_0 = arith.constant 0 : i32
    %2 = arith.cmpi ne, %1, %c0_i32_0 : i32
    scf.if %2 {
      %cst_15 = arith.constant 0.000000e+00 : f32
      %19 = vector.broadcast %cst_15 : f32 to vector<8x128xf32>
      %c0_16 = arith.constant 0 : index
      %c0_17 = arith.constant 0 : index
      %20 = vector.load %arg8[%c0_16, %c0_17] : memref<8x128xf32, #tpu.memory_space<vmem>>, vector<8x128xf32>
      tpu.vector_store %arg8[%c0_16, %c0_17], %19 {strides = array<i32>} : memref<8x128xf32, #tpu.memory_space<vmem>>, vector<8x128xf32>,
    } else {
    }
    %c0 = arith.constant 0 : index
    %c0_1 = arith.constant 0 : index
    %3 = vector.load %arg2[%c0, %c0_1] : memref<8x128xf32, #tpu.memory_space<vmem>>, vector<8x128xf32>
    %c0_2 = arith.constant 0 : index
    %c0_3 = arith.constant 0 : index
    %4 = vector.load %arg3[%c0_2, %c0_3] : memref<128x256xf32, #tpu.memory_space<vmem>>, vector<128x256xf32>
    %cst = arith.constant dense<0.000000e+00> : vector<8x256xf32>
    %5 = tpu.matmul %3, %4, %cst {dimension_numbers = #tpu.dot_dimension_numbers<[1], [0], [0], [1], [0, 0, 1, 1], [], []>} : vector<8x128xf32>, vector<128x256xf32>, vector<8x256xf32> -> vector<8x256xf32>
    %c0_4 = arith.constant 0 : index
    %c0_5 = arith.constant 0 : index
    %6 = vector.load %arg4[%c0_4, %c0_5] : memref<1x256xf32, #tpu.memory_space<vmem>>, vector<1x256xf32>
    %7 = vector.broadcast %6 : vector<1x256xf32> to vector<8x256xf32>
    %8 = arith.addf %5, %7 : vector<8x256xf32>
    %cst_6 = arith.constant 0.000000e+00 : f32
    %9 = vector.broadcast %cst_6 : f32 to vector<8x256xf32>
    %10 = arith.maximumf %8, %9 : vector<8x256xf32>
    %c0_7 = arith.constant 0 : index
    %c0_8 = arith.constant 0 : index
    %11 = vector.load %arg8[%c0_7, %c0_8] : memref<8x128xf32, #tpu.memory_space<vmem>>, vector<8x128xf32>
    %c0_9 = arith.constant 0 : index
    %c0_10 = arith.constant 0 : index
    %12 = vector.load %arg5[%c0_9, %c0_10] : memref<256x128xf32, #tpu.memory_space<vmem>>, vector<256x128xf32>
    %cst_11 = arith.constant dense<0.000000e+00> : vector<8x128xf32>
    %13 = tpu.matmul %10, %12, %cst_11 {dimension_numbers = #tpu.dot_dimension_numbers<[1], [0], [0], [1], [0, 0, 1, 1], [], []>} : vector<8x256xf32>, vector<256x128xf32>, vector<8x128xf32> -> vector<8x128xf32>
    %14 = arith.addf %11, %13 : vector<8x128xf32>
    %c0_12 = arith.constant 0 : index
    %c0_13 = arith.constant 0 : index
    %15 = vector.load %arg8[%c0_12, %c0_13] : memref<8x128xf32, #tpu.memory_space<vmem>>, vector<8x128xf32>
    tpu.vector_store %arg8[%c0_12, %c0_13], %14 {strides = array<i32>} : memref<8x128xf32, #tpu.memory_space<vmem>>, vector<8x128xf32>,
    %c1_i32 = arith.constant 1 : i32
    %16 = arith.cmpi eq, %arg1, %c1_i32 : i32
    %17 = arith.extui %16 : i1 to i32
    %c0_i32_14 = arith.constant 0 : i32
    %18 = arith.cmpi ne, %17, %c0_i32_14 : i32
    scf.if %18 {
      %c0_15 = arith.constant 0 : index
      %c0_16 = arith.constant 0 : index
      %19 = vector.load %arg8[%c0_15, %c0_16] : memref<8x128xf32, #tpu.memory_space<vmem>>, vector<8x128xf32>
      %c0_17 = arith.constant 0 : index
      %c0_18 = arith.constant 0 : index
      %20 = vector.load %arg6[%c0_17, %c0_18] : memref<1x128xf32, #tpu.memory_space<vmem>>, vector<1x128xf32>
      %21 = vector.broadcast %20 : vector<1x128xf32> to vector<8x128xf32>
      %22 = arith.addf %19, %21 : vector<8x128xf32>
      %c0_19 = arith.constant 0 : index
      %c0_20 = arith.constant 0 : index
      %23 = vector.load %arg7[%c0_19, %c0_20] : memref<8x128xf32, #tpu.memory_space<vmem>>, vector<8x128xf32>
      tpu.vector_store %arg7[%c0_19, %c0_20], %22 {strides = array<i32>} : memref<8x128xf32, #tpu.memory_space<vmem>>, vector<8x128xf32>,
    } else {
    }
    return
  }
  func.func @transform_0(%arg0: i32, %arg1: i32) -> (i32, i32) {
    %c0_i32 = arith.constant 0 : i32
    %c0_i32_0 = arith.constant 0 : i32
    return %arg0, %c0_i32 : i32, i32
  }
  func.func @transform_1(%arg0: i32, %arg1: i32) -> (i32, i32) {
    %c0_i32 = arith.constant 0 : i32
    %c0_i32_0 = arith.constant 0 : i32
    return %c0_i32, %arg1 : i32, i32
  }
  func.func @transform_2(%arg0: i32, %arg1: i32) -> (i32, i32) {
    %c0_i32 = arith.constant 0 : i32
    %c0_i32_0 = arith.constant 0 : i32
    return %c0_i32, %arg1 : i32, i32
  }
  func.func @transform_3(%arg0: i32, %arg1: i32) -> (i32, i32) {
    %c0_i32 = arith.constant 0 : i32
    %c0_i32_0 = arith.constant 0 : i32
    return %arg1, %c0_i32 : i32, i32
  }
  func.func @transform_4(%arg0: i32, %arg1: i32) -> (i32, i32) {
    %c0_i32 = arith.constant 0 : i32
    %c0_i32_0 = arith.constant 0 : i32
    %c0_i32_1 = arith.constant 0 : i32
    return %c0_i32, %c0_i32_0 : i32, i32
  }
  func.func @transform_5(%arg0: i32, %arg1: i32) -> (i32, i32) {
    %c0_i32 = arith.constant 0 : i32
    %c0_i32_0 = arith.constant 0 : i32
    return %arg0, %c0_i32 : i32, i32
  }
}

</mosaic_0001>

<bundles_post_ra>
// kernel: feed_forward.1
= control target key start
LH: loop header
LB: loop body
LE: loop exit
PB: predicated region body
PF: predicated region fallthrough
CT: control target
= control target key end

     0   :  { %s1669_s0 = inlined_call_operand.hbm [shape: f32[16,128], index: 0, kind: input, shape index: {}]   ;;  %s1670_s1 = inlined_call_operand.hbm [shape: f32[128,512], index: 1, kind: input, shape index: {}]   ;;  %s1671_s2 = inlined_call_operand.vmem [shape: f32[1,512], index: 2, kind: input, shape index: {}]   ;;  %s1672_s3 = inlined_call_operand.hbm [shape: f32[512,128], index: 3, kind: input, shape index: {}]   ;;  %s1673_s4 = inlined_call_operand.vmem [shape: f32[1,128], index: 4, kind: input, shape index: {}]   ;;  %s1674_s5 = inlined_call_operand.hbm [shape: f32[16,128], index: 5, kind: output, shape index: {}]  }
   0x1   :  { %1685 = sst [smem:[#allocation20_spill]] %s1670_s1 }
   0x2   :  { %1686 = sst [smem:[#allocation21_spill]] %s1671_s2 }
   0x3   :  { %1687 = sst [smem:[#allocation22_spill]] %s1673_s4 }
   0x4   :  { %1688 = sst [smem:[#allocation23_spill]] %s1674_s5 }
   0x5   :  { %10 = vsyncpa [#allocation4], 0 }
   0x6   :  { %12 = vsyncpa [#allocation4 + $0x1], 0 }
   0x7   :  { %13 = vsyncpa [#allocation7], 0 }
   0x8   :  { %15 = vsyncpa [#allocation7 + $0x1], 0 }
   0x9   :  { %16 = vsyncpa [#allocation5], 0 }
   0xa   :  { %18 = vsyncpa [#allocation5 + $0x1], 0  ;;  %s1243_s18 = smov 0   ;;  %s1245_s19 = smov 0  }
   0xb   :  { %s1247_s20 = smov 0   ;;  %s1249_s21 = smov 0  }
   0xc   :  { %s1251_s22 = smov 0   ;;  %s1253_s23 = smov 0  }
   0xd   :  { %s1255_s24 = smov 0   ;;  %s1257_s25 = smov 0  }
   0xe   :  { %s1259_s26 = smov 0   ;;  %s1261_s27 = smov 0  }
   0xf   :  { %s1263_s28 = smov 0  }
  0x10 LB: > { %1689 = sst [smem:[#allocation13_spill]] %s1180_s23  ;;  %p51_p0 = scmp.eq.s32.totalorder %s1200_s28, 0  ;;  %s1200_s28 = sphi %s1263_s28, %s24_s28   ;;  %s1196_s27 = sphi %s1261_s27, %s1724_s27   ;;  %s1192_s26 = sphi %s1259_s26, %s1731_s26   ;;  %s1188_s25 = sphi %s1257_s25, %s1722_s25   ;;  %s1184_s24 = sphi %s1255_s24, %s1730_s24   ;;  %s1180_s23 = sphi %s1253_s23, %s1721_s23   ;;  %s1176_s22 = sphi %s1251_s22, %s1729_s22   ;;  %s1172_s21 = sphi %s1249_s21, %s1728_s21   ;;  %s1168_s20 = sphi %s1247_s20, %s1727_s20   ;;  %s1164_s19 = sphi %s1245_s19, %s1726_s19   ;;  %s1160_s18 = sphi %s1243_s18, %s1725_s18  }
  0x11   : > { %1690 = sst [smem:[#allocation14_spill]] %s1188_s25  ;;  %p76_p1 = scmp.ne.s32.totalorder %s1168_s20, %s1164_s19 }
  0x12   : > { %1691 = sst [smem:[#allocation15_spill]] %s1196_s27  ;;  %p1675_p2 = scmp.lt.s32.totalorder %s1200_s28, 4 }
  0x13   : > { %s226_s30 = sand.u32 1, %s1200_s28   ;;  %p78_p3 = por %p76_p1, %p51_p0 }
  0x14   : > { %s228_s6 = sand.u32 1, %s1168_s20   ;;  %s764_s7 = sshll.u32 %s1192_s26, 8 }
  0x15   : > { %s1308_s8 = sshll.u32 %s228_s6, 8  ;;  %s1692_s1 = sld [smem:[#allocation20_spill]] }
  0x16   : > { %p1317_p4 = pnand %p1675_p2, %p78_p3  ;;  %s230_s13 = scalar_lea.vmem [#allocation6], %s1308_s8 }
  0x17   : > { %s237_s14 = sshll.u32 %s230_s13, 4  ;;  %s1324_s15 = scalar_lea.sflag [#allocation7], %s226_s30  ;;  %s1322_s14 = int_to_ptr.vmem [resolvable:$true] %s237_s14 }
  0x18   : > { %p1678_p6 = pneg %p1317_p4 }
  0x1b   : > { %s1313_s11 = scalar_lea.hbm %s1692_s1, %s764_s7  ;;  %s989_s7 = scalar_lea.hbm %s1692_s1, 8192 }
  0x1c   : > { %s984_s16 = scalar_lea.hbm %s1313_s11, 4096  ;;  %p990_p9 = scmp.lt.u32.totalorder %s1313_s11, %s1692_s1 }
  0x1d   : > { %p985_p5 = scmp.ne.s32.totalorder %s1313_s11, %s984_s16  ;;  %p991_p10 = scmp.lt.u32.totalorder %s989_s7, %s984_s16 }
  0x1e   : > { %p993_p12 = scmp.lt.u32.totalorder %s984_s16, %s1313_s11 }
  0x1f   : > { %p987_p7 = pnand %p1678_p6, %p985_p5  ;;  %p992_p11 = por %p991_p10, %p990_p9 }
  0x21   : > { %p988_p8 = pneg %p987_p7  ;;  %p994_p13 = por %p993_p12, %p992_p11 }
  0x23   : > { %p995_p1 = pnand %p994_p13, %p988_p8 }
  0x25   : > { %998 = shalt.err (!%p995_p1)
}
  0x26   : > { %s999_s30 = scalar_lea.vmem %s1322_s14, 4096  ;;  %s1202_s13 = smov [#allocation6]  }
  0x27   : > { %p1000_p3 = scmp.ne.s32.totalorder %s1322_s14, %s999_s30  ;;  %s1004_s17 = sshll.u32 %s1202_s13, 4  ;;  %s1005_s17 = int_to_ptr.vmem [resolvable:$false] %s1004_s17 }
  0x28   : > { %s1006_s6 = scalar_lea.vmem %s1005_s17, 8192  ;;  %p1007_p2 = scmp.lt.s32.totalorder %s1322_s14, %s1005_s17 }
  0x29   : > { %p1002_p5 = pnand %p1000_p3, %p1678_p6  ;;  %p1008_p9 = scmp.lt.s32.totalorder %s1006_s6, %s999_s30 }
  0x2b   : > { %p1003_p7 = pneg %p1002_p5  ;;  %p1009_p10 = por %p1008_p9, %p1007_p2 }
  0x2d   : > { %p1010_p11 = pnand %p1009_p10, %p1003_p7 }
  0x2f   : > { %1013 = shalt.err (!%p1010_p11)
}
  0x30   : > { %s1203_s16 = smov 512   ;;  %s1204_s7 = smov 256  }
  0x31   : > { %s1205_s9 = smov 16   ;;  %p751_p2 = scmp.ge.s32.totalorder %s1200_s28, 1 }
  0x32   : > { %879 = dma.hbm_to_vmem [thread:$0]  (!%p1317_p4), %s1313_s11, 4096, %s1322_s14, %s1324_s15, %s1203_s16, %s1204_s7, %s1205_s9  }
  0x33   : > { %p274_p8 = scmp.lt.s32.totalorder %s1200_s28, 5  ;;  %s1359_s30 = sadd.s32 4294967295, %s1200_s28  }
  0x34   : > { %s740_s13 = sadd.s32 4294967294, %s1200_s28   ;;  %s33_s17 = sadd.s32 1, %s1192_s26 }
  0x35   : > { %p1354_p12 = pnand %p751_p2, %p274_p8  ;;  %p34_p13 = scmp.ge.s32.totalorder %s33_s17, 2 }
  0x36   : > { %s36_s6 = sadd.s32 1, %s1196_s27  ;;  %s43_s11 = sadd.s32 1, %s1180_s23 }
  0x37   : > { %s1694_s10 = scalar_select %p1354_p12, 1, 0 }
  0x38   : > { %p50_p1 = scmp.ne.s32.totalorder %s1180_s23, %s1176_s22  ;;  %s1733_s17 = smov (%p34_p13, %s33_s17), 0 }
  0x39   : > { %1695 = sst [smem:[#allocation16_spill]] %s1733_s17  ;;  %s1735_s6 = smov (!%p34_p13, %s36_s6), %s1196_s27 }
  0x3a   : > { %p1375_p3 = por %p51_p0, %p50_p1  ;;  %p56_p5 = scmp.ne.s32.totalorder %s1176_s22, %s1172_s21 }
  0x3b   : > { %p38_p7 = scmp.ge.s32.totalorder %s1735_s6, 2  ;;  %p57_p9 = scmp.eq.s32.totalorder %s1359_s30, 0 }
  0x3c   : > { %s66_s16 = ssub.s32 %s1192_s26, %s1733_s17  ;;  %p82_p10 = scmp.ne.s32.totalorder %s1164_s19, %s1160_s18 }
  0x3d   : > { %s1737_s6 = smov (%p38_p7, %s1735_s6), 0  ;;  %p1391_p11 = por %p57_p9, %p56_p5 }
  0x3e   : > { %1697 = sst [smem:[#allocation17_spill]] %s1737_s6  ;;  %p67_p0 = scmp.eq.s32.totalorder %s66_s16, 0 }
  0x3f   : > { %s1698_s7 = scalar_select %p1391_p11, 1, 0 }
  0x40   : > { %s40_s9 = ssub.s32 %s1196_s27, %s1737_s6  ;;  %p1397_p2 = por %p82_p10, %p57_p9 }
  0x41   : > { %p41_p8 = scmp.eq.s32.totalorder %s40_s9, 0  ;;  %p179_p13 = scmp.eq.s32.totalorder %s1359_s30, 3 }
  0x42   : > { %s1699_s29 = scalar_select %p1397_p2, 1, 0 }
  0x43   : > { %s1700_s1 = sadd.s32 1, %s1168_s20  ;;  %p1413_p7 = por %p179_p13, %p50_p1 }
  0x44   : > { %s1405_s18 = scalar_select %p67_p0, %s1168_s20, %s1700_s1  }
  0x45   : > { %s1408_s17 = scalar_select %p41_p8, %s1180_s23, %s43_s11  }
  0x46   : > { %1701 = sst [smem:[#allocation18_spill]] %s1405_s18  ;;  %p185_p6 = scmp.eq.s32.totalorder %s740_s13, 3 }
  0x47   : > { %1702 = sst [smem:[#allocation19_spill]] %s1408_s17  ;;  %s208_s25 = sand.u32 1, %s1180_s23  }
  0x48   : > { %s1703_s5 = scalar_select %p1413_p7, 1, 0 }
  0x49   : > { %s744_s16 = sshll.u32 %s1196_s27, 7  ;;  %p1422_p9 = por %p185_p6, %p56_p5 }
  0x4a   : > { %s743_s9 = sshll.u32 %s208_s25, 3  ;;  %s1429_s1 = scalar_lea.hbm %s1669_s0, %s744_s16 }
  0x4b   : > { %s1704_s6 = scalar_select %p1422_p9, 1, 0 }
  0x4c   : > { %p1705_p10 = scmp.lt.s32.totalorder %s1200_s28, 4  ;;  %s212_s11 = scalar_lea.vmem [#allocation3], %s743_s9 }
  0x4d   : > { %s219_s27 = sshll.u32 %s212_s11, 4  ;;  %s209_s17 = scalar_lea.sflag [#allocation4], %s208_s25  ;;  %s1439_s27 = int_to_ptr.vmem [resolvable:$true] %s219_s27 }
  0x4e   : > { %p1435_p1 = pnand %p1705_p10, %p1375_p3  ;;  %s1014_s2 = scalar_lea.hbm %s1429_s1, 128 }
  0x4f   : > { %p1015_p6 = scmp.ne.s32.totalorder %s1429_s1, %s1014_s2  ;;  %s1019_s16 = scalar_lea.hbm %s1669_s0, 256 }
  0x50   : > { %p1016_p5 = pneg %p1435_p1  ;;  %p1020_p3 = scmp.lt.u32.totalorder %s1429_s1, %s1669_s0 }
  0x51   : > { %p1021_p13 = scmp.lt.u32.totalorder %s1019_s16, %s1014_s2  ;;  %p1023_p9 = scmp.lt.u32.totalorder %s1014_s2, %s1429_s1 }
  0x52   : > { %p1017_p0 = pnand %p1016_p5, %p1015_p6 }
  0x53   : > { %p1022_p10 = por %p1021_p13, %p1020_p3 }
  0x54   : > { %p1018_p8 = pneg %p1017_p0 }
  0x55   : > { %p1024_p7 = por %p1023_p9, %p1022_p10 }
  0x57   : > { %p1025_p2 = pnand %p1024_p7, %p1018_p8 }
  0x59   : > { %1028 = shalt.err (!%p1025_p2)
}
  0x5a   : > { %s1029_s25 = scalar_lea.vmem %s1439_s27, 128  ;;  %s1206_s9 = smov [#allocation3]  }
  0x5b   : > { %p1030_p6 = scmp.ne.s32.totalorder %s1439_s27, %s1029_s25  ;;  %s1034_s11 = sshll.u32 %s1206_s9, 4  ;;  %s1035_s11 = int_to_ptr.vmem [resolvable:$false] %s1034_s11 }
  0x5c   : > { %s1036_s23 = scalar_lea.vmem %s1035_s11, 256  ;;  %p1037_p12 = scmp.lt.s32.totalorder %s1439_s27, %s1035_s11 }
  0x5d   : > { %p1032_p0 = pnand %p1030_p6, %p1016_p5  ;;  %p1038_p3 = scmp.lt.s32.totalorder %s1036_s23, %s1029_s25 }
  0x5f   : > { %p1033_p11 = pneg %p1032_p0  ;;  %p1039_p13 = por %p1038_p3, %p1037_p12 }
  0x61   : > { %p1040_p9 = pnand %p1039_p13, %p1033_p11 }
  0x63   : > { %1043 = shalt.err (!%p1040_p9)
}
  0x64   : > { %876 = dma.hbm_to_vmem [thread:$0]  (!%p1435_p1), %s1429_s1, 128, %s1439_s27, %s209_s17  }
  0x65   : > { %s765_s18 = sshll.u32 %s1192_s26, 12  ;;  %s259_s2 = scalar_lea.vmem [#allocation8], %s1308_s8 }
  0x66   : > { %s266_s4 = sshll.u32 %s259_s2, 4  ;;  %s1471_s9 = scalar_lea.hbm %s1672_s3, %s765_s18  ;;  %s1473_s4 = int_to_ptr.vmem [resolvable:$true] %s266_s4 }
  0x67   : > { %s1044_s13 = scalar_lea.hbm %s1471_s9, 4096  ;;  %p1707_p11 = pneg %p1317_p4 }
  0x68   : > { %p1045_p12 = scmp.ne.s32.totalorder %s1471_s9, %s1044_s13  ;;  %s1049_s17 = scalar_lea.hbm %s1672_s3, 8192 }
  0x69   : > { %p1050_p1 = scmp.lt.u32.totalorder %s1471_s9, %s1672_s3  ;;  %p1051_p5 = scmp.lt.u32.totalorder %s1049_s17, %s1044_s13 }
  0x6a   : > { %p1047_p2 = pnand %p1045_p12, %p1707_p11  ;;  %p1053_p10 = scmp.lt.u32.totalorder %s1044_s13, %s1471_s9 }
  0x6b   : > { %p1052_p8 = por %p1051_p5, %p1050_p1 }
  0x6c   : > { %p1048_p7 = pneg %p1047_p2 }
  0x6d   : > { %p1054_p6 = por %p1053_p10, %p1052_p8 }
  0x6f   : > { %p1055_p0 = pnand %p1054_p6, %p1048_p7 }
  0x71   : > { %1058 = shalt.err (!%p1055_p0)
}
  0x72   : > { %s1059_s11 = scalar_lea.vmem %s1473_s4, 4096  ;;  %p1708_p13 = pmov %p1707_p11 }
  0x73   : > { %p1060_p3 = scmp.ne.s32.totalorder %s1473_s4, %s1059_s11  ;;  %s1207_s23 = smov [#allocation8]  }
  0x74   : > { %s1064_s18 = sshll.u32 %s1207_s23, 4  ;;  %s1065_s18 = int_to_ptr.vmem [resolvable:$false] %s1064_s18 }
  0x75   : > { %p1062_p9 = pnand %p1060_p3, %p1708_p13  ;;  %s1066_s2 = scalar_lea.vmem %s1065_s18, 8192 }
  0x76   : > { %p1067_p11 = scmp.lt.s32.totalorder %s1473_s4, %s1065_s18  ;;  %p1068_p2 = scmp.lt.s32.totalorder %s1066_s2, %s1059_s11 }
  0x77   : > { %p1063_p12 = pneg %p1062_p9 }
  0x78   : > { %p1069_p1 = por %p1068_p2, %p1067_p11 }
  0x7a   : > { %p1070_p5 = pnand %p1069_p1, %p1063_p12 }
  0x7c   : > { %1073 = shalt.err (!%p1070_p5)
}
  0x7d   : > { %s1208_s14 = smov 128   ;;  %s1209_s16 = smov 8  }
  0x7e   : > { %882 = dma.hbm_to_vmem [thread:$0]  (!%p1317_p4), %s1471_s9, 4096, %s1473_s4, %s1324_s15, %s1208_s14, %s1208_s14, %s1209_s16  }
  0x7f   : > { %p1709_p7 = scmp.ne.s32.totalorder %s1694_s10, 0 }
  0x80   : > { %s1502_s13 = sand.u32 (!%p1709_p7), 1, %s1176_s22   ;;  %p1710_p8 = scmp.ne.s32.totalorder (!%p1709_p7), %s1698_s7, 0 }
  0x81   : > { %278 = sbr.rel (%p1709_p7) target bundleno = 661 (0x295), region = 40  ;;  %s752_s27 = sshll.u32 (!%p1709_p7), %s1502_s13, 3 }
  0x82   : > { %s281_s8 = scalar_lea.sflag (!%p1709_p7), [#allocation4], %s1502_s13  ;;  %s1506_s17 = scalar_lea.vmem (!%p1709_p7), [#allocation3], %s752_s27 }
  0x88   : > { %1147 = dma.done.wait (%p1710_p8), %s281_s8, 128  }
  0x89   : > { %1149 = vsyncadd (%p1710_p8), %s281_s8, 4294967168  ;;  %s289_s12 = sand.u32 1, %s1359_s30   ;;  %s291_s15 = sand.u32 1, %s1164_s19  }
  0x8a   : > { %s753_s10 = sshll.u32 %s291_s15, 8  ;;  %s290_s4 = scalar_lea.sflag [#allocation7], %s289_s12 }
  0x8b   : > { %s1514_s9 = scalar_lea.vmem [#allocation6], %s753_s10  ;;  %p1711_p4 = scmp.ne.s32.totalorder %s1699_s29, 0 }
  0x8d   : > { %1151 = dma.done.wait (%p1711_p4), %s290_s4, 8192  }
  0x8e   : > { %1153 = vsyncadd (%p1711_p4), %s290_s4, 4294959104  ;;  %s756_s1 = sshll.u32 %s1184_s24, 1  ;;  %s1712_s11 = sld [smem:[#allocation21_spill]] }
  0x8f   : > { %p345_p10 = scmp.lt.s32.totalorder %s756_s1, 3  ;;  %s1527_s23 = scalar_lea.vmem [#allocation8], %s753_s10 }
  0x90   : > { %s1529_s18 = scalar_lea.vmem [#allocation9], %s752_s27  ;;  %p757_p6 = scmp.ne.s32.totalorder %s1184_s24, 0 }
  0x91   : > { %s1739_s1 = smov (!%p345_p10, %s756_s1), 3  ;;  %v1210_v0 = vmov (!%p757_p6), 0.0  }
  0x92   : > { %353 = sbr.rel (%p757_p6) target bundleno = 153 (0x99), region = 56  ;;  %354 = vst [vmem:[#allocation2] sm:$0xff] (!%p757_p6), %v1210_v0 }
  0x94   : > { %s347_s30 = scalar_lea.vmem %s1712_s11, %s1739_s1 }
  0x99 PF: > { %v357_v1 = vld [vmem:[%s1514_s9 + $0x8] sm:$0xff]  ;;  %v359_v2 = vld [vmem:[%s1514_s9 + $0x18] sm:$0xff]  ;;  %v356_v3 = vld [vmem:[%s1514_s9] sm:$0xff]  ;;  %v1211_v8 = vmov 0.0   ;;  %p758_p0 = scmp.ne.s32.totalorder %s1184_s24, 1 }
  0x9a   : > { %v801_v4 = vpack.c.bf16 %v359_v2, %v357_v1  ;;  %v358_v5 = vld [vmem:[%s1514_s9 + $0x10] sm:$0xff]  ;;  %v361_v6 = vld [vmem:[%s1514_s9 + $0x28] sm:$0xff]  ;;  %v363_v7 = vld [vmem:[%s1514_s9 + $0x38] sm:$0xff]  ;;  %464 = vmatprep.mubr.f32.mxu0 %v1211_v8  ;;  %s1714_s8 = sld [smem:[#allocation22_spill]] (!%p758_p0) }
  0x9b   : > { %v803_v9 = vpack.c.bf16 %v358_v5, %v356_v3  ;;  %v805_v10 = vpack.c.bf16 %v363_v7, %v361_v6  ;;  %v360_v11 = vld [vmem:[%s1514_s9 + $0x20] sm:$0xff]  ;;  %v362_v12 = vld [vmem:[%s1514_s9 + $0x30] sm:$0xff]  ;;  %v365_v13 = vld [vmem:[%s1514_s9 + $0x48] sm:$0xff] }
  0x9c   : > { %802 = vmatprep.subr.bf16.mxu0 %v801_v4  ;;  %v367_v14 = vld [vmem:[%s1514_s9 + $0x58] sm:$0xff]  ;;  %v807_v15 = vpack.c.bf16 %v362_v12, %v360_v11  ;;  %v364_v17 = vld [vmem:[%s1514_s9 + $0x40] sm:$0xff]  ;;  %v366_v18 = vld [vmem:[%s1514_s9 + $0x50] sm:$0xff] }
  0x9d   : > { %804 = vmatpush1.bf16.msra.mxu0 %v803_v9  ;;  %v809_v16 = vpack.c.bf16 %v367_v14, %v365_v13  ;;  %v369_v19 = vld [vmem:[%s1514_s9 + $0x68] sm:$0xff]  ;;  %v371_v20 = vld [vmem:[%s1514_s9 + $0x78] sm:$0xff]  ;;  %v811_v21 = vpack.c.bf16 %v366_v18, %v364_v17  ;;  %v368_v23 = vld [vmem:[%s1514_s9 + $0x60] sm:$0xff] }
  0x9e   : > { %806 = vmatprep.subr.bf16.mxu0 %v805_v10  ;;  %v813_v22 = vpack.c.bf16 %v371_v20, %v369_v19  ;;  %v370_v24 = vld [vmem:[%s1514_s9 + $0x70] sm:$0xff]  ;;  %v373_v25 = vld [vmem:[%s1514_s9 + $0x88] sm:$0xff]  ;;  %v375_v26 = vld [vmem:[%s1514_s9 + $0x98] sm:$0xff] }
  0x9f   : > { %v372_v27 = vld [vmem:[%s1514_s9 + $0x80] sm:$0xff]  ;;  %v374_v28 = vld [vmem:[%s1514_s9 + $0x90] sm:$0xff]  ;;  %v491_v30 = vld [vmem:[%s1527_s23 + $0x88] sm:$0xff]  ;;  %v815_v32 = vpack.c.bf16 %v370_v24, %v368_v23  ;;  %v817_v37 = vpack.c.bf16 %v375_v26, %v373_v25 }
  0xa0   : > { %v490_v29 = vld [vmem:[%s1527_s23 + $0x80] sm:$0xff]  ;;  %v475_v34 = vld [vmem:[%s1527_s23 + $0x8] sm:$0xff]  ;;  %v492_v35 = vld [vmem:[%s1527_s23 + $0x90] sm:$0xff]  ;;  %v819_v47 = vpack.c.bf16 %v374_v28, %v372_v27 }
  0xa1   : > { %808 = vmatpush1.bf16.msra.mxu0 %v807_v15  ;;  %v474_v31 = vld [vmem:[%s1527_s23] sm:$0xff]  ;;  %v833_v33 = vpack.c.bf16 %v491_v30, %v490_v29  ;;  %v493_v36 = vld [vmem:[%s1527_s23 + $0x98] sm:$0xff]  ;;  %v476_v40 = vld [vmem:[%s1527_s23 + $0x10] sm:$0xff] }
  0xa2   : > { %810 = vmatprep.subr.bf16.mxu0 %v809_v16  ;;  %v835_v38 = vpack.c.bf16 %v475_v34, %v474_v31  ;;  %v837_v39 = vpack.c.bf16 %v493_v36, %v492_v35  ;;  %v477_v41 = vld [vmem:[%s1527_s23 + $0x18] sm:$0xff]  ;;  %v494_v42 = vld [vmem:[%s1527_s23 + $0xa0] sm:$0xff]  ;;  %v377_v43 = vld [vmem:[%s1514_s9 + $0xa8] sm:$0xff]  ;;  %v390_v35 = vlaneseq }
  0xa3   : > { %v379_v44 = vld [vmem:[%s1514_s9 + $0xb8] sm:$0xff]  ;;  %834 = vmatprep.subr.bf16.mxu1 %v833_v33  ;;  %v495_v45 = vld [vmem:[%s1527_s23 + $0xa8] sm:$0xff]  ;;  %v839_v46 = vpack.c.bf16 %v477_v41, %v476_v40  ;;  %v376_v48 = vld [vmem:[%s1514_s9 + $0xa0] sm:$0xff] }
  0xa4   : > { %836 = vmatpush3.bf16.msra.mxu1 %v835_v38  ;;  %v841_v49 = vpack.c.bf16 %v495_v45, %v494_v42  ;;  %v478_v50 = vld [vmem:[%s1527_s23 + $0x20] sm:$0xff]  ;;  %v479_v51 = vld [vmem:[%s1527_s23 + $0x28] sm:$0xff]  ;;  %v821_v52 = vpack.c.bf16 %v379_v44, %v377_v43  ;;  %v378_v53 = vld [vmem:[%s1514_s9 + $0xb0] sm:$0xff]  ;;  %v391_v36 = vshrl.u32 %v390_v35, 7 }
  0xa5   : > { %812 = vmatpush1.bf16.msra.mxu0 %v811_v21  ;;  %838 = vmatprep.subr.bf16.mxu1 %v837_v39  ;;  %v496_v54 = vld [vmem:[%s1527_s23 + $0xb0] sm:$0xff]  ;;  %v497_v55 = vld [vmem:[%s1527_s23 + $0xb8] sm:$0xff]  ;;  %v381_v56 = vld [vmem:[%s1514_s9 + $0xc8] sm:$0xff]  ;;  %v843_v58 = vpack.c.bf16 %v479_v51, %v478_v50  ;;  %v823_v59 = vpack.c.bf16 %v378_v53, %v376_v48 }
  0xa6   : > { %814 = vmatprep.subr.bf16.mxu0 %v813_v22  ;;  %v383_v57 = vld [vmem:[%s1514_s9 + $0xd8] sm:$0xff]  ;;  %v380_v60 = vld [vmem:[%s1514_s9 + $0xc0] sm:$0xff]  ;;  %v845_v61 = vpack.c.bf16 %v497_v55, %v496_v54  ;;  %v480_v62 = vld [vmem:[%s1527_s23 + $0x30] sm:$0xff]  ;;  %v396_v39 = vsub.s32 1, %v391_v36 }
  0xa7   : > { %v481_v63 = vld [vmem:[%s1527_s23 + $0x38] sm:$0xff]  ;;  %v825_v0 = vpack.c.bf16 %v383_v57, %v381_v56  ;;  %v382_v1 = vld [vmem:[%s1514_s9 + $0xd0] sm:$0xff]  ;;  %v498_v2 = vld [vmem:[%s1527_s23 + $0xc0] sm:$0xff] }
  0xa8   : > { %840 = vmatpush3.bf16.msra.mxu1 %v839_v46  ;;  %v499_v3 = vld [vmem:[%s1527_s23 + $0xc8] sm:$0xff]  ;;  %v387_v5 = vld [vmem:[%s1514_s9 + $0xf8] sm:$0xff]  ;;  %v847_v6 = vpack.c.bf16 %v481_v63, %v480_v62  ;;  %v827_v7 = vpack.c.bf16 %v382_v1, %v380_v60  ;;  %v384_v8 = vld [vmem:[%s1514_s9 + $0xe0] sm:$0xff] }
  0xa9   : > { %816 = vmatpush1.bf16.msra.mxu0 %v815_v32  ;;  %842 = vmatprep.subr.bf16.mxu1 %v841_v49  ;;  %v385_v4 = vld [vmem:[%s1514_s9 + $0xe8] sm:$0xff]  ;;  %v849_v9 = vpack.c.bf16 %v499_v3, %v498_v2  ;;  %v482_v10 = vld [vmem:[%s1527_s23 + $0x40] sm:$0xff]  ;;  %v386_v13 = vld [vmem:[%s1514_s9 + $0xf0] sm:$0xff] }
  0xaa   : > { %818 = vmatprep.subr.bf16.mxu0 %v817_v37  ;;  %v483_v11 = vld [vmem:[%s1527_s23 + $0x48] sm:$0xff]  ;;  %v829_v12 = vpack.c.bf16 %v387_v5, %v385_v4  ;;  %v500_v14 = vld [vmem:[%s1527_s23 + $0xd0] sm:$0xff]  ;;  %v501_v15 = vld [vmem:[%s1527_s23 + $0xd8] sm:$0xff]  ;;  %v831_v17 = vpack.c.bf16 %v386_v13, %v384_v8  ;;  %v392_v37 = vsub.s32 0, %v391_v36 }
  0xab   : > { %v851_v16 = vpack.c.bf16 %v483_v11, %v482_v10  ;;  %v853_v18 = vpack.c.bf16 %v501_v15, %v500_v14  ;;  %v484_v19 = vld [vmem:[%s1527_s23 + $0x50] sm:$0xff]  ;;  %v485_v20 = vld [vmem:[%s1527_s23 + $0x58] sm:$0xff]  ;;  %v502_v21 = vld [vmem:[%s1527_s23 + $0xe0] sm:$0xff] }
  0xac   : > { %844 = vmatpush3.bf16.msra.mxu1 %v843_v58  ;;  %v503_v22 = vld [vmem:[%s1527_s23 + $0xe8] sm:$0xff]  ;;  %v855_v23 = vpack.c.bf16 %v485_v20, %v484_v19  ;;  %v355_v24 = vld [vmem:[%s1506_s17] sm:$0xff]  ;;  %v486_v26 = vld [vmem:[%s1527_s23 + $0x60] sm:$0xff] }
  0xad   : > { %820 = vmatpush1.bf16.msra.mxu0 %v819_v47  ;;  %846 = vmatprep.subr.bf16.mxu1 %v845_v61  ;;  %v857_v25 = vpack.c.bf16 %v503_v22, %v502_v21  ;;  %v487_v27 = vld [vmem:[%s1527_s23 + $0x68] sm:$0xff]  ;;  %v504_v29 = vld [vmem:[%s1527_s23 + $0xf0] sm:$0xff]  ;;  %v505_v30 = vld [vmem:[%s1527_s23 + $0xf8] sm:$0xff] }
  0xae   : > { %822 = vmatprep.subr.bf16.mxu0 %v821_v52  ;;  %v859_v28 = vpack.c.bf16 %v487_v27, %v486_v26  ;;  %v861_v31 = vpack.c.bf16 %v505_v30, %v504_v29  ;;  %v488_v32 = vld [vmem:[%s1527_s23 + $0x70] sm:$0xff]  ;;  %v489_v33 = vld [vmem:[%s1527_s23 + $0x78] sm:$0xff]  ;;  %v388_v38 = vld [vmem:[%s347_s30] sm:$0x3] }
  0xaf   : > { %v863_v34 = vpack.c.bf16 %v489_v33, %v488_v32  ;;  %v393_v40 = vrot.slane %v388_v38, %v392_v37  ;;  %v397_v41 = vrot.slane %v388_v38, %v396_v39  ;;  %v473_v49 = vld [vmem:[#allocation2] sm:$0xff] }
  0xb0   : > { %848 = vmatpush3.bf16.msra.mxu1 %v847_v6  ;;  %v759_v54 = vld [vmem:[%s1714_s8] ss:$0 sm:$0xff] (!%p758_p0) }
  0xb1   : > { %824 = vmatpush1.bf16.msra.mxu0 %v823_v59  ;;  %850 = vmatprep.subr.bf16.mxu1 %v849_v9 }
  0xb2   : > { %826 = vmatprep.subr.bf16.mxu0 %v825_v0 }
  0xb4   : > { %852 = vmatpush3.bf16.msra.mxu1 %v851_v16 }
  0xb5   : > { %828 = vmatpush1.bf16.msra.mxu0 %v827_v7  ;;  %854 = vmatprep.subr.bf16.mxu1 %v853_v18 }
  0xb6   : > { %830 = vmatprep.subr.bf16.mxu0 %v829_v12 }
  0xb8   : > { %856 = vmatpush3.bf16.msra.mxu1 %v855_v23 }
  0xb9   : > { %832 = vmatpush1.bf16.msra.mxu0 %v831_v17  ;;  %858 = vmatprep.subr.bf16.mxu1 %v857_v25 }
  0xbc   : > { %465 = vmatmul.mubr.f32.vlgmr.msra.gmra.mrb[0].mxu0 %v355_v24  ;;  %860 = vmatpush3.bf16.msra.mxu1 %v859_v28 }
  0xbd   : > { %862 = vmatprep.subr.bf16.mxu1 %v861_v31 }
  0xc0   : > { %864 = vmatpush3.bf16.msra.mxu1 %v863_v34 }
 0x18f   : > { %v466_v42 = vpop.f32.mrb[0].mxu0 }
 0x190   : > { %v467_v43 = vadd.f32 %v466_v42, %v393_v40  ;;  %v468_v44 = vpop.f32.mrb[1].mxu0 }
 0x191   : > { %v469_v45 = vadd.f32 %v468_v44, %v397_v41 }
 0x192   : > { %v471_v47 = vmax.f32 %v467_v43, 0.0 }
 0x193   : > { %v472_v46 = vmax.f32 %v469_v45, 0.0 }
 0x195   : > { %570 = vmatprep.mubr.f32.mxu1 %v472_v46 }
 0x196   : > { %571 = vmatmul.mubr.f32.vlgmr.msra.gmra.mrb[0].mxu1 %v471_v47 }
 0x269   : > { %v798_v48 = vpop.f32.mrb[0].mxu1  ;;  %581 = sbr.rel (%p758_p0) target bundleno = 634 (0x27a), region = 60 }
 0x26a   : > { %v799_v50 = vpop.f32.mrb[1].mxu1 }
 0x26b   : > { %v800_v51 = vadd.f32 %v799_v50, %v798_v48 }
 0x26d   : > { %v576_v52 = vadd.f32 %v800_v51, %v473_v49 }
 0x26f   : > { %577 = vst [vmem:[#allocation2] sm:$0xff] %v576_v52 }
 0x276   : > { %v582_v53 = vld [vmem:[#allocation2] sm:$0xff] }
 0x277   : > { %v590_v55 = vadd.f32 %v759_v54, %v582_v53 }
 0x279   : > { %591 = vst [vmem:[%s1529_s18] sm:$0xff] %v590_v55 }
 0x27a PF: > { %s1715_s17 = sld [smem:[#allocation14_spill]]  ;;  %s1716_s4 = sld [smem:[#allocation23_spill]] }
 0x27b   : > { %s606_s24 = sshll.u32 %s1529_s18, 4  ;;  %s593_s1 = scalar_lea.sflag [#allocation5], %s1502_s13  ;;  %s607_s24 = int_to_ptr.vmem [resolvable:$true] %s606_s24 }
 0x27c   : > { %s1074_s7 = scalar_lea.vmem %s607_s24, 128  ;;  %p1717_p13 = scmp.ne.s32.totalorder %s1703_s5, 0 }
 0x27d   : > { %p1075_p3 = scmp.ne.s32.totalorder %s607_s24, %s1074_s7  ;;  %s1212_s25 = smov [#allocation9]  }
 0x27e   : > { %s1078_s11 = sshll.u32 %s1212_s25, 4  ;;  %s1079_s11 = int_to_ptr.vmem [resolvable:$false] %s1078_s11 }
 0x27f   : > { %p1076_p9 = pnand %p1075_p3, %p1717_p13  ;;  %s1080_s30 = scalar_lea.vmem %s1079_s11, 256 }
 0x280   : > { %s761_s12 = sshll.u32 %s1715_s17, 7  ;;  %p1081_p11 = scmp.lt.s32.totalorder %s607_s24, %s1079_s11 }
 0x281   : > { %s1611_s9 = scalar_lea.hbm %s1716_s4, %s761_s12  ;;  %p1077_p12 = pneg %p1076_p9 }
 0x282   : > { %p1082_p2 = scmp.lt.s32.totalorder %s1080_s30, %s1074_s7 }
 0x284   : > { %p1083_p1 = por %p1082_p2, %p1081_p11 }
 0x286   : > { %p1084_p5 = pnand %p1083_p1, %p1077_p12 }
 0x288   : > { %1087 = shalt.err (!%p1084_p5)
}
 0x289   : > { %s1088_s13 = scalar_lea.hbm %s1611_s9, 128  ;;  %s1092_s29 = scalar_lea.hbm %s1716_s4, 256 }
 0x28a   : > { %p1089_p7 = scmp.ne.s32.totalorder %s1611_s9, %s1088_s13  ;;  %p1093_p10 = scmp.lt.u32.totalorder %s1611_s9, %s1716_s4 }
 0x28b   : > { %p1094_p6 = scmp.lt.u32.totalorder %s1092_s29, %s1088_s13  ;;  %p1096_p3 = scmp.lt.u32.totalorder %s1088_s13, %s1611_s9 }
 0x28c   : > { %p1090_p8 = pnand %p1089_p7, %p1717_p13 }
 0x28d   : > { %p1095_p0 = por %p1094_p6, %p1093_p10 }
 0x28e   : > { %p1091_p4 = pneg %p1090_p8 }
 0x28f   : > { %p1097_p9 = por %p1096_p3, %p1095_p0 }
 0x291   : > { %p1098_p12 = pnand %p1097_p9, %p1091_p4 }
 0x293   : > { %1101 = shalt.err (!%p1098_p12)
}
 0x294   : > { %871 = dma.vmem_to_hbm [thread:$0]  (%p1717_p13), %s607_s24, 128, %s1611_s9, %s593_s1  }
 0x295 PF: > { %p888_p11 = scmp.ge.s32.totalorder %s1200_s28, 2  ;;  %s618_s16 = sand.u32 1, %s1172_s21  }
 0x296   : > { %p1718_p2 = scmp.ne.s32.totalorder %s1704_s6, 0  ;;  %s619_s27 = scalar_lea.sflag [#allocation5], %s618_s16 }
 0x298   : > { %p884_p1 = pnand %p888_p11, %p1718_p2 }
 0x29a   : > { %1155 = dma.done.wait (!%p884_p1), %s619_s27, 128  }
 0x29b   : > { %1157 = vsyncadd (!%p884_p1), %s619_s27, 4294967168  ;;  %s24_s28 = sadd.s32 1, %s1200_s28   ;;  %s1719_s8 = sld [smem:[#allocation18_spill]] }
 0x29c   : > { %p21_p5 = scmp.ge.s32.totalorder %s24_s28, 6   ;;  %s1720_s5 = sld [smem:[#allocation13_spill]] }
 0x29d   : > { %s1721_s23 = sld [smem:[#allocation19_spill]]  ;;  %s1722_s25 = sld [smem:[#allocation15_spill]] }
 0x29e   : > { %s1723_s17 = sld [smem:[#allocation16_spill]]  ;;  %s1724_s27 = sld [smem:[#allocation17_spill]] }
 0x29f   : > { %s1725_s18 = smov %s1164_s19  ;;  %s1726_s19 = smov %s1168_s20 }
 0x2a0   : > { %s1728_s21 = smov %s1176_s22  ;;  %s1730_s24 = smov %s1192_s26 }
 0x2a1   : > { %s1727_s20 = smov %s1719_s8  ;;  %23 = sbr.rel (!%p21_p5) target bundleno = 16 (0x10), region = 120 }
 0x2a2   : > { %s1729_s22 = smov %s1720_s5 }
 0x2a4   : > { %s1731_s26 = smov %s1723_s17 }
 0x2a8   :  { %624 = vsyncpa [#allocation4], 1 }
 0x2a9   :  { %626 = vsyncpa [#allocation4 + $0x1], 1 }
 0x2aa   :  { %627 = vsyncpa [#allocation7], 1 }
 0x2ab   :  { %629 = vsyncpa [#allocation7 + $0x1], 1 }
 0x2ac   :  { %630 = vsyncpa [#allocation5], 1 }
 0x2ad   :  { %632 = vsyncpa [#allocation5 + $0x1], 1 }

</bundles_post_ra>
